<compile_context>
chip_gen: v7x
topology: tpu7x:2x2x1
jax: 0.10.0
libtpu: 0.0.40
codegen_flags: <defaults>
</compile_context>

<pallas_src>
import jax
import jax.numpy as jnp
from jax.experimental import pallas as pl
from jax.experimental.pallas import tpu as pltpu


def _relu_kernel(x_ref, o_ref):
    # Elementwise ReLU on the current VMEM tile (one vmax per vreg on the VPU).
    o_ref[...] = jnp.maximum(x_ref[...], 0)


def _choose_lane_width(total: int) -> int:
    """Largest lane-dense width (multiple of 128) that divides `total`."""
    for lane in (2048, 1024, 512, 256, 128):
        if total % lane == 0:
            return lane
    return 0  # total is not a multiple of 128 (rare); caller bulk/tail splits.


def _chip_tuning():
    """Trace-time chip-aware (block_bytes, vmem_limit_bytes) selection."""
    block_bytes = 4 * 1024 * 1024        # conservative default
    vmem_limit = 32 * 1024 * 1024        # > v5e's 16 MiB scoped default
    try:
        info = pltpu.get_tpu_info()
        vmem = int(getattr(info, "vmem_capacity_bytes", 0) or 0)
    except Exception:
        vmem = 0
    if vmem >= 96 * 1024 * 1024:
        # v5e / v6e class (128 MiB VMEM): 8 MiB blocks are free; 4 live
        # double-buffered tiles = 32 MiB, well under a 64 MiB scoped cap.
        block_bytes = 8 * 1024 * 1024
        vmem_limit = 64 * 1024 * 1024
    elif vmem > 0:
        # v7x class (64 MiB per-TC VMEM): 8 MiB blocks halve the ~0.35 us
        # per-step overhead relative to the ~2.5 us/block DMA at 3.2 TB/s;
        # 32 MiB live buffers stay under a 48 MiB scoped cap.
        block_bytes = 8 * 1024 * 1024
        vmem_limit = 48 * 1024 * 1024
    return block_bytes, vmem_limit


def _relu_pallas_2d(x2d, block_bytes, vmem_limit):
    """Run the streaming ReLU kernel on a lane-dense (rows, lane) view."""
    rows, lane = x2d.shape
    itemsize = jnp.dtype(x2d.dtype).itemsize

    target_rows = max(32, block_bytes // (lane * itemsize))
    if rows <= target_rows:
        block_rows = rows                     # full array dims: always legal
    else:
        # Multiple of 32 rows: safe sublane packing for f32/bf16/int8/fp8.
        block_rows = max(32, (target_rows // 32) * 32)

    grid = (pl.cdiv(rows, block_rows),)       # edge masking handles partials

    return pl.pallas_call(
        _relu_kernel,
        out_shape=jax.ShapeDtypeStruct((rows, lane), x2d.dtype),
        grid_spec=pltpu.PrefetchScalarGridSpec(
            num_scalar_prefetch=0,
            grid=grid,
            in_specs=[pl.BlockSpec((block_rows, lane), lambda i: (i, 0))],
            out_specs=pl.BlockSpec((block_rows, lane), lambda i: (i, 0)),
        ),
        # TODO(synk): on v7x, verify in an xprof trace that both TensorCores
        # stream grid steps; if only one is active, switch this axis to
        # pltpu.CORE_PARALLEL (or split explicitly via core_map). "parallel"
        # is the safe/correct choice on single-TC v5e/v6e.
        compiler_params=pltpu.CompilerParams(
            dimension_semantics=("parallel",),
            vmem_limit_bytes=vmem_limit,
        ),
        cost_estimate=pl.CostEstimate(
            flops=rows * lane,
            transcendentals=0,
            bytes_accessed=2 * rows * lane * itemsize,
        ),
    )(x2d)


def lrp_relu_forward(x: jax.Array) -> jax.Array:
    """Forward pass of LRP_ReLU: elementwise ReLU, shape & dtype preserved."""
    orig_shape = x.shape
    total = x.size
    if total == 0:
        return x

    block_bytes, vmem_limit = _chip_tuning()
    flat = x.reshape(-1)                      # metadata-only (row-major)

    lane = _choose_lane_width(total)
    if lane:
        # Common case: exact lane-dense retiling, zero extra HBM passes.
        out2d = _relu_pallas_2d(flat.reshape(total // lane, lane),
                                block_bytes, vmem_limit)
        return out2d.reshape(orig_shape)

    # Rare fallback: flat size not a multiple of 128.  Bulk/tail split —
    # the kernel streams the 128-divisible prefix; the <128-element tail is
    # one tiny plain-XLA maximum.  No full-tensor pad/slice round trips.
    bulk = (total // 128) * 128
    tail = total - bulk
    pieces = []
    if bulk:
        lane_b = _choose_lane_width(bulk)     # >= 128, always succeeds
        out_bulk = _relu_pallas_2d(flat[:bulk].reshape(bulk // lane_b, lane_b),
                                   block_bytes, vmem_limit)
        pieces.append(out_bulk.reshape(-1))
    if tail:
        pieces.append(jnp.maximum(flat[bulk:], 0))
    out_flat = pieces[0] if len(pieces) == 1 else jnp.concatenate(pieces)
    return out_flat.reshape(orig_shape)


def lrp_relu_relprop(R: jax.Array) -> jax.Array:
    # relprop(R) = R (identity; no compute, no kernel needed).
    return R


if __name__ == "__main__":
    key = jax.random.PRNGKey(0)
    # Small NCHW input consistent with the module's conv-style usage.
    x = jax.random.normal(key, (2, 4, 16, 16), dtype=jnp.float32)

    y = lrp_relu_forward(x)
    y = jax.block_until_ready(y)

    # Correctness check against plain JAX reference.
    y_ref = jnp.maximum(x, 0.0)
    assert y.shape == x.shape and y.dtype == x.dtype
    assert bool(jnp.allclose(y, y_ref)), "mismatch vs reference ReLU"

    # Exercise the non-128-divisible bulk/tail fallback path as well.
    x_odd = jax.random.normal(jax.random.PRNGKey(2), (2, 3, 67), jnp.float32)
    y_odd = jax.block_until_ready(lrp_relu_forward(x_odd))
    assert bool(jnp.allclose(y_odd, jnp.maximum(x_odd, 0.0))), "fallback mismatch"

    # relprop is identity.
    R = jax.random.normal(jax.random.PRNGKey(1), (2, 4, 16, 16), jnp.float32)
    assert bool(jnp.allclose(lrp_relu_relprop(R), R))

    print("KERNEL_OK")
</pallas_src>

<mosaic_0001>
module attributes {stable_mosaic.version = 11 : i64} {
  func.func @_relu_kernel(%arg0: i32, %arg1: memref<1x2048xf32, #tpu.memory_space<vmem>>, %arg2: memref<1x2048xf32, #tpu.memory_space<vmem>>) attributes {dimension_semantics = [#tpu.dimension_semantics<parallel>], iteration_bounds = array<i64: 1>, scalar_prefetch = 0 : i64, scratch_operands = 0 : i64, tpu.core_type = #tpu.core_type<tc>, window_params = [{transform_indices = @transform_0, window_bounds = array<i64: 1, 2048>}, {transform_indices = @transform_1, window_bounds = array<i64: 1, 2048>}]} {
    %c0 = arith.constant 0 : index
    %c0_0 = arith.constant 0 : index
    %0 = vector.load %arg1[%c0, %c0_0] : memref<1x2048xf32, #tpu.memory_space<vmem>>, vector<1x2048xf32>
    %cst = arith.constant 0.000000e+00 : f32
    %1 = vector.broadcast %cst : f32 to vector<1x2048xf32>
    %2 = arith.maximumf %0, %1 : vector<1x2048xf32>
    %c0_1 = arith.constant 0 : index
    %c0_2 = arith.constant 0 : index
    %3 = vector.load %arg2[%c0_1, %c0_2] : memref<1x2048xf32, #tpu.memory_space<vmem>>, vector<1x2048xf32>
    tpu.vector_store %arg2[%c0_1, %c0_2], %2 {strides = array<i32>} : memref<1x2048xf32, #tpu.memory_space<vmem>>, vector<1x2048xf32>,
    return
  }
  func.func @transform_0(%arg0: i32) -> (i32, i32) {
    %c0_i32 = arith.constant 0 : i32
    %c0_i32_0 = arith.constant 0 : i32
    return %arg0, %c0_i32 : i32, i32
  }
  func.func @transform_1(%arg0: i32) -> (i32, i32) {
    %c0_i32 = arith.constant 0 : i32
    %c0_i32_0 = arith.constant 0 : i32
    return %arg0, %c0_i32 : i32, i32
  }
}

</mosaic_0001>

<bundles_post_ra>
// kernel: tpu_custom_call.1
= control target key start
LH: loop header
LB: loop body
LE: loop exit
PB: predicated region body
PF: predicated region fallthrough
CT: control target
= control target key end

     0   :  { %6 = vsyncpa [#allocation3], 0  ;;  %s128_s0 = inlined_call_operand.hbm [shape: f32[1,2048], index: 0, kind: input, shape index: {}]   ;;  %s129_s1 = inlined_call_operand.hbm [shape: f32[1,2048], index: 1, kind: output, shape index: {}]  }
   0x1   :  { %7 = vsyncpa [#allocation4], 0  ;;  %s92_s6 = smov [#allocation2]   ;;  %s44_s10 = scalar_lea.hbm %s128_s0, 256 }
   0x2   :  { %s14_s7 = sshll.u32 %s92_s6, 4  ;;  %p45_p0 = scmp.ne.s32.totalorder %s128_s0, %s44_s10  ;;  %s15_s7 = int_to_ptr.vmem [resolvable:$true] %s14_s7 }
   0x3   :  { %p48_p1 = scmp.lt.u32.totalorder %s44_s10, %s128_s0 }
   0x5   :  { %p50_p2 = pnand %p48_p1, %p45_p0 }
   0x7   :  { %53 = shalt.err (!%p50_p2)
}
   0x8   :  { %s54_s15 = scalar_lea.vmem %s15_s7, 256  ;;  %p59_p4 = scmp.lt.s32.totalorder %s15_s7, %s15_s7 }
   0x9   :  { %p55_p3 = scmp.ne.s32.totalorder %s15_s7, %s54_s15  ;;  %p60_p5 = scmp.lt.s32.totalorder %s54_s15, %s54_s15 }
   0xb   :  { %p61_p6 = por %p60_p5, %p59_p4 }
   0xd   :  { %p62_p7 = pnand %p61_p6, %p55_p3 }
   0xf   :  { %65 = shalt.err (!%p62_p7)
}
  0x10   :  { %17 = dma.hbm_to_vmem [thread:$0]  %s128_s0, 256, %s15_s7, [#allocation3]  }
  0x11   :  { %88 = dma.done.wait [#allocation3], 256  }
  0x12   :  { %89 = vsyncadd [#allocation3], 4294967040  ;;  %s93_s18 = smov [#allocation5]   ;;  %v21_v0 = vld [vmem:[#allocation2] sm:$0xff]  ;;  %v22_v1 = vld [vmem:[#allocation2 + $0x8] sm:$0xff] }
  0x13   :  { %s33_s19 = sshll.u32 %s93_s18, 4  ;;  %v23_v2 = vmax.f32 %v21_v0, 0.0  ;;  %v24_v3 = vmax.f32 %v22_v1, 0.0  ;;  %s34_s19 = int_to_ptr.vmem [resolvable:$true] %s33_s19 }
  0x14   :  { %s66_s20 = scalar_lea.vmem %s34_s19, 256  ;;  %p71_p9 = scmp.lt.s32.totalorder %s34_s19, %s34_s19 }
  0x15   :  { %25 = vst [vmem:[#allocation5] sm:$0xff] %v23_v2  ;;  %26 = vst [vmem:[#allocation5 + $0x8] sm:$0xff] %v24_v3  ;;  %p67_p8 = scmp.ne.s32.totalorder %s34_s19, %s66_s20  ;;  %p72_p10 = scmp.lt.s32.totalorder %s66_s20, %s66_s20 }
  0x17   :  { %p73_p11 = por %p72_p10, %p71_p9 }
  0x19   :  { %p74_p12 = pnand %p73_p11, %p67_p8 }
  0x1b   :  { %77 = shalt.err (!%p74_p12)
}
  0x1c   :  { %s78_s22 = scalar_lea.hbm %s129_s1, 256 }
  0x1d   :  { %p79_p13 = scmp.ne.s32.totalorder %s129_s1, %s78_s22  ;;  %p82_p0 = scmp.lt.u32.totalorder %s78_s22, %s129_s1 }
  0x1f   :  { %p84_p1 = pnand %p82_p0, %p79_p13 }
  0x21   :  { %87 = shalt.err (!%p84_p1)
}
  0x22   :  { %36 = dma.vmem_to_hbm [thread:$0]  %s34_s19, 256, %s129_s1, [#allocation4]  }
  0x23   :  { %90 = dma.done.wait [#allocation4], 256  }
  0x24   :  { %91 = vsyncadd [#allocation4], 4294967040 }
  0x25   :  { %40 = vsyncpa [#allocation3], 1 }
  0x26   :  { %41 = vsyncpa [#allocation4], 1 }

</bundles_post_ra>
